<compile_context>
chip_gen: v5e
topology: v5e:2x2
jax: 0.10.0
libtpu: 0.0.40
codegen_flags: <defaults>
</compile_context>

<pallas_src>
import functools

import numpy as np
import jax
import jax.numpy as jnp
from jax import lax
from jax.experimental import pallas as pl
from jax.experimental.pallas import tpu as pltpu


def cnn_second_kernel(xp_ref, w1_ref, b1_ref, mp_ref, w2_ref, c2_ref, b2_ref, o_ref):
    # xp_ref: (B*64, LP)     im2col conv1 patches for this batch block (batch-major rows)
    # w1_ref: (B*8, B*64)    block-diagonal conv1 weights  kron(I_B, W1.reshape(8, 64))
    # b1_ref: (B*8, 1)       conv1 bias tiled over the batch block
    # mp_ref: (4, LP, LP)    maxpool stride-4 lane-selection matrices (one per window tap)
    # w2_ref: (2, B*8, B*8)  block-diagonal conv2 tap weights kron(I_B, W2[:, :, k])
    # c2_ref: (2, LP, LP)    fused (conv2 tap gather) @ (avgpool) lane matrices
    # b2_ref: (B*8, LP)      conv2 bias pre-propagated through the avgpool (lane-masked)
    # o_ref : (B*8, LP)      log-softmax output (padded lanes sliced off in the wrapper)
    nb = o_ref.shape[0] // 8

    # conv1 (k=8, s=2) + bias + ReLU as a single MXU matmul over the whole batch block
    h = jnp.dot(w1_ref[...], xp_ref[...], preferred_element_type=jnp.float32)
    h = jnp.maximum(h + b1_ref[...], 0.0)                               # (B*8, LP)

    # maxpool k=4 s=4: elementwise max of 4 stride-4 lane selections
    p = jnp.dot(h, mp_ref[0], preferred_element_type=jnp.float32)
    for j in range(1, 4):
        p = jnp.maximum(p, jnp.dot(h, mp_ref[j], preferred_element_type=jnp.float32))

    # conv2 (k=2, s=2) fused with avgpool(4):
    #   acc = sum_k  kron(I_B, W2_k) @ (p @ (C2_k @ AP))        (+ avgpooled bias, ReLU)
    acc = jnp.dot(w2_ref[0],
                  jnp.dot(p, c2_ref[0], preferred_element_type=jnp.float32),
                  preferred_element_type=jnp.float32)
    acc = acc + jnp.dot(w2_ref[1],
                        jnp.dot(p, c2_ref[1], preferred_element_type=jnp.float32),
                        preferred_element_type=jnp.float32)
    h3 = jnp.maximum(acc + b2_ref[...], 0.0)                            # (B*8, LP)

    # log_softmax over the 8 channels of each batch group (8 sublane rows per group)
    for b in range(nb):
        hb = h3[b * 8:(b + 1) * 8, :]
        mx = jnp.max(hb, axis=0, keepdims=True)
        z = hb - mx
        lse = jnp.log(jnp.sum(jnp.exp(z), axis=0, keepdims=True))
        o_ref[b * 8:(b + 1) * 8, :] = z - lse


def _sel_matrix(width, stride, offset, n_valid, scale=1.0):
    """Host constant: S[l, t] = scale iff l == stride*t + offset and t < n_valid."""
    s = np.zeros((width, width), np.float32)
    for t in range(n_valid):
        s[stride * t + offset, t] = scale
    return s


@functools.partial(jax.jit, static_argnames=("batch_block",))
def cnn_second_forward(x, w1, b1, w2, b2, *, batch_block=8):
    """x: (N, 8, L) NCW.  w1: (8,8,8)=(Cout,Cin,K), b1: (8,), w2: (8,8,2), b2: (8,)."""
    x = x.astype(jnp.float32)
    n, cin, length = x.shape
    assert cin == 8
    l1 = (length - 8) // 2 + 1          # conv1 (k=8, s=2)
    l1p = (l1 - 4) // 4 + 1             # maxpool(4)
    l2 = (l1p - 2) // 2 + 1             # conv2 (k=2, s=2)
    l2p = (l2 - 4) // 4 + 1             # avgpool(4)
    assert l2p >= 1
    lp = ((l1 + 127) // 128) * 128      # lane width, multiple of 128
    bb = max(1, min(batch_block, n))    # batch block per grid step
    npad = ((n + bb - 1) // bb) * bb
    steps = npad // bb

    # ---- wrapper-side layout plumbing (pure data movement, done by XLA) ----
    # im2col for conv1: patches[n, c*8 + k, t] = x[n, c, 2t + k]
    patches = jnp.stack(
        [x[:, :, k: k + 2 * (l1 - 1) + 1: 2] for k in range(8)], axis=2
    )                                                        # (N, Cin, K, l1)
    xp = patches.reshape(n, 64, l1)
    xp = jnp.pad(xp, ((0, npad - n), (0, 0), (0, lp - l1)))  # pad batch + lanes
    xp = xp.reshape(npad * 64, lp)                           # batch-major row stacking

    # block-diagonal weights: one MXU matmul covers the whole batch block
    eye_b = jnp.eye(bb, dtype=jnp.float32)
    w1blk = jnp.kron(eye_b, w1.reshape(8, 64).astype(jnp.float32))            # (bb*8, bb*64)
    w2blk = jnp.stack([jnp.kron(eye_b, w2[:, :, k].astype(jnp.float32))
                       for k in range(2)])                                     # (2, bb*8, bb*8)
    b1t = jnp.tile(b1.astype(jnp.float32), bb).reshape(bb * 8, 1)
    lane_mask = (np.arange(lp) < l2p).astype(np.float32)
    b2slab = jnp.tile(b2.astype(jnp.float32), bb).reshape(bb * 8, 1) * lane_mask[None, :]

    # host-constant lane-selection matrices (fetched once: constant block index)
    mp = np.stack([_sel_matrix(lp, 4, j, l1p) for j in range(4)])              # (4, lp, lp)
    ap = sum(_sel_matrix(lp, 4, j, l2p, 0.25) for j in range(4))               # (lp, lp)
    c2ap = np.stack([_sel_matrix(lp, 2, k, l2) @ ap for k in range(2)])        # (2, lp, lp)

    flops = steps * (2 * (bb * 8) * (bb * 64) * lp            # conv1
                     + 6 * 2 * (bb * 8) * lp * lp             # maxpool(4) + conv2/avg taps(2)
                     + 2 * 2 * (bb * 8) * (bb * 8) * lp)      # conv2 channel mix
    bytes_accessed = 4 * (xp.size + npad * 8 * lp + w1blk.size + b1t.size
                          + mp.size + w2blk.size + c2ap.size + b2slab.size)
    cost = pl.CostEstimate(flops=flops, transcendentals=npad * 9 * lp,
                           bytes_accessed=bytes_accessed)

    out = pl.pallas_call(
        cnn_second_kernel,
        out_shape=jax.ShapeDtypeStruct((npad * 8, lp), jnp.float32),
        grid=(steps,),
        in_specs=[
            pl.BlockSpec((bb * 64, lp), lambda i: (i, 0)),        # im2col patches (per block)
            pl.BlockSpec((bb * 8, bb * 64), lambda i: (0, 0)),    # conv1 block-diag weights
            pl.BlockSpec((bb * 8, 1), lambda i: (0, 0)),          # conv1 bias
            pl.BlockSpec((4, lp, lp), lambda i: (0, 0, 0)),       # maxpool selections
            pl.BlockSpec((2, bb * 8, bb * 8), lambda i: (0, 0, 0)),  # conv2 block-diag weights
            pl.BlockSpec((2, lp, lp), lambda i: (0, 0, 0)),       # fused conv2-tap x avgpool
            pl.BlockSpec((bb * 8, lp), lambda i: (0, 0)),         # avgpooled conv2 bias slab
        ],
        out_specs=pl.BlockSpec((bb * 8, lp), lambda i: (i, 0)),
        compiler_params=pltpu.CompilerParams(
            dimension_semantics=("parallel",),
            vmem_limit_bytes=32 * 1024 * 1024,
        ),
        cost_estimate=cost,
    )(xp, w1blk, b1t, jnp.asarray(mp), w2blk, jnp.asarray(c2ap), b2slab)

    return out[: n * 8, :l2p].reshape(n, 8, l2p)                  # (N, 8, l2p), NCW


def reference_forward(x, w1, b1, w2, b2):
    """Pure-JAX reference (lax.conv) mirroring the PyTorch module."""
    dn1 = lax.conv_dimension_numbers(x.shape, w1.shape, ("NCH", "OIH", "NCH"))
    h = lax.conv_general_dilated(x, w1, (2,), "VALID", dimension_numbers=dn1)
    h = h + b1[None, :, None]
    h = jnp.maximum(h, 0.0)
    n, c, l = h.shape
    h = jnp.max(h[:, :, : (l // 4) * 4].reshape(n, c, l // 4, 4), axis=-1)
    dn2 = lax.conv_dimension_numbers(h.shape, w2.shape, ("NCH", "OIH", "NCH"))
    h = lax.conv_general_dilated(h, w2, (2,), "VALID", dimension_numbers=dn2)
    h = h + b2[None, :, None]
    n, c, l = h.shape
    h = jnp.mean(h[:, :, : (l // 4) * 4].reshape(n, c, l // 4, 4), axis=-1)
    h = jnp.maximum(h, 0.0)
    return jax.nn.log_softmax(h, axis=1)


if __name__ == "__main__":
    key = jax.random.PRNGKey(0)
    kx, k1, kb1, k2, kb2 = jax.random.split(key, 5)

    N, C, L = 2, 8, 256
    x = jax.random.normal(kx, (N, C, L), jnp.float32)

    # Deterministic param init (PyTorch-default-style uniform bounds).
    bound1 = 1.0 / (8 * 8) ** 0.5
    w1 = jax.random.uniform(k1, (8, 8, 8), jnp.float32, -bound1, bound1)   # (Cout, Cin, K)
    b1 = jax.random.uniform(kb1, (8,), jnp.float32, -bound1, bound1)
    bound2 = 1.0 / (8 * 2) ** 0.5
    w2 = jax.random.uniform(k2, (8, 8, 2), jnp.float32, -bound2, bound2)   # (Cout, Cin, K)
    b2 = jax.random.uniform(kb2, (8,), jnp.float32, -bound2, bound2)

    out = jax.block_until_ready(cnn_second_forward(x, w1, b1, w2, b2))
    ref = reference_forward(x, w1, b1, w2, b2)

    assert out.shape == (N, 8, 3), out.shape
    assert jnp.allclose(out, ref, atol=1e-4, rtol=1e-4), float(jnp.max(jnp.abs(out - ref)))
    print("KERNEL_OK")
</pallas_src>

<mosaic_0001>
module attributes {stable_mosaic.version = 11 : i64} {
  func.func @cnn_second_kernel(%arg0: i32, %arg1: memref<128x128xf32, #tpu.memory_space<vmem>>, %arg2: memref<16x128xf32, #tpu.memory_space<vmem>>, %arg3: memref<16x1xf32, #tpu.memory_space<vmem>>, %arg4: memref<4x128x128xf32, #tpu.memory_space<vmem>>, %arg5: memref<2x16x16xf32, #tpu.memory_space<vmem>>, %arg6: memref<2x128x128xf32, #tpu.memory_space<vmem>>, %arg7: memref<16x128xf32, #tpu.memory_space<vmem>>, %arg8: memref<16x128xf32, #tpu.memory_space<vmem>>) attributes {dimension_semantics = [#tpu.dimension_semantics<parallel>], iteration_bounds = array<i64: 1>, scalar_prefetch = 0 : i64, scratch_operands = 0 : i64, tpu.core_type = #tpu.core_type<tc>, window_params = [{transform_indices = @transform_0, window_bounds = array<i64: 128, 128>}, {pipeline_mode = #tpu.pipeline_mode<synchronous>, transform_indices = @transform_1, window_bounds = array<i64: 16, 128>}, {pipeline_mode = #tpu.pipeline_mode<synchronous>, transform_indices = @transform_2, window_bounds = array<i64: 16, 1>}, {pipeline_mode = #tpu.pipeline_mode<synchronous>, transform_indices = @transform_3, window_bounds = array<i64: 4, 128, 128>}, {pipeline_mode = #tpu.pipeline_mode<synchronous>, transform_indices = @transform_4, window_bounds = array<i64: 2, 16, 16>}, {pipeline_mode = #tpu.pipeline_mode<synchronous>, transform_indices = @transform_5, window_bounds = array<i64: 2, 128, 128>}, {pipeline_mode = #tpu.pipeline_mode<synchronous>, transform_indices = @transform_6, window_bounds = array<i64: 16, 128>}, {transform_indices = @transform_7, window_bounds = array<i64: 16, 128>}]} {
    %c0 = arith.constant 0 : index
    %c0_0 = arith.constant 0 : index
    %0 = vector.load %arg2[%c0, %c0_0] : memref<16x128xf32, #tpu.memory_space<vmem>>, vector<16x128xf32>
    %c0_1 = arith.constant 0 : index
    %c0_2 = arith.constant 0 : index
    %1 = vector.load %arg1[%c0_1, %c0_2] : memref<128x128xf32, #tpu.memory_space<vmem>>, vector<128x128xf32>
    %cst = arith.constant dense<0.000000e+00> : vector<16x128xf32>
    %2 = tpu.matmul %0, %1, %cst {dimension_numbers = #tpu.dot_dimension_numbers<[1], [0], [0], [1], [0, 0, 1, 1], [], []>} : vector<16x128xf32>, vector<128x128xf32>, vector<16x128xf32> -> vector<16x128xf32>
    %c0_3 = arith.constant 0 : index
    %c0_4 = arith.constant 0 : index
    %3 = vector.load %arg3[%c0_3, %c0_4] : memref<16x1xf32, #tpu.memory_space<vmem>>, vector<16x1xf32>
    %4 = vector.broadcast %3 : vector<16x1xf32> to vector<16x128xf32>
    %5 = arith.addf %2, %4 : vector<16x128xf32>
    %cst_5 = arith.constant 0.000000e+00 : f32
    %6 = vector.broadcast %cst_5 : f32 to vector<16x128xf32>
    %7 = arith.maximumf %5, %6 : vector<16x128xf32>
    %c0_6 = arith.constant 0 : index
    %c0_7 = arith.constant 0 : index
    %c0_8 = arith.constant 0 : index
    %8 = vector.load %arg4[%c0_6, %c0_7, %c0_8] : memref<4x128x128xf32, #tpu.memory_space<vmem>>, vector<1x128x128xf32>
    %9 = vector.shape_cast %8 : vector<1x128x128xf32> to vector<128x128xf32>
    %cst_9 = arith.constant dense<0.000000e+00> : vector<16x128xf32>
    %10 = tpu.matmul %7, %9, %cst_9 {dimension_numbers = #tpu.dot_dimension_numbers<[1], [0], [0], [1], [0, 0, 1, 1], [], []>} : vector<16x128xf32>, vector<128x128xf32>, vector<16x128xf32> -> vector<16x128xf32>
    %c1 = arith.constant 1 : index
    %c0_10 = arith.constant 0 : index
    %c0_11 = arith.constant 0 : index
    %11 = vector.load %arg4[%c1, %c0_10, %c0_11] : memref<4x128x128xf32, #tpu.memory_space<vmem>>, vector<1x128x128xf32>
    %12 = vector.shape_cast %11 : vector<1x128x128xf32> to vector<128x128xf32>
    %cst_12 = arith.constant dense<0.000000e+00> : vector<16x128xf32>
    %13 = tpu.matmul %7, %12, %cst_12 {dimension_numbers = #tpu.dot_dimension_numbers<[1], [0], [0], [1], [0, 0, 1, 1], [], []>} : vector<16x128xf32>, vector<128x128xf32>, vector<16x128xf32> -> vector<16x128xf32>
    %14 = arith.maximumf %10, %13 : vector<16x128xf32>
    %c2 = arith.constant 2 : index
    %c0_13 = arith.constant 0 : index
    %c0_14 = arith.constant 0 : index
    %15 = vector.load %arg4[%c2, %c0_13, %c0_14] : memref<4x128x128xf32, #tpu.memory_space<vmem>>, vector<1x128x128xf32>
    %16 = vector.shape_cast %15 : vector<1x128x128xf32> to vector<128x128xf32>
    %cst_15 = arith.constant dense<0.000000e+00> : vector<16x128xf32>
    %17 = tpu.matmul %7, %16, %cst_15 {dimension_numbers = #tpu.dot_dimension_numbers<[1], [0], [0], [1], [0, 0, 1, 1], [], []>} : vector<16x128xf32>, vector<128x128xf32>, vector<16x128xf32> -> vector<16x128xf32>
    %18 = arith.maximumf %14, %17 : vector<16x128xf32>
    %c3 = arith.constant 3 : index
    %c0_16 = arith.constant 0 : index
    %c0_17 = arith.constant 0 : index
    %19 = vector.load %arg4[%c3, %c0_16, %c0_17] : memref<4x128x128xf32, #tpu.memory_space<vmem>>, vector<1x128x128xf32>
    %20 = vector.shape_cast %19 : vector<1x128x128xf32> to vector<128x128xf32>
    %cst_18 = arith.constant dense<0.000000e+00> : vector<16x128xf32>
    %21 = tpu.matmul %7, %20, %cst_18 {dimension_numbers = #tpu.dot_dimension_numbers<[1], [0], [0], [1], [0, 0, 1, 1], [], []>} : vector<16x128xf32>, vector<128x128xf32>, vector<16x128xf32> -> vector<16x128xf32>
    %22 = arith.maximumf %18, %21 : vector<16x128xf32>
    %c0_19 = arith.constant 0 : index
    %c0_20 = arith.constant 0 : index
    %c0_21 = arith.constant 0 : index
    %23 = vector.load %arg5[%c0_19, %c0_20, %c0_21] : memref<2x16x16xf32, #tpu.memory_space<vmem>>, vector<1x16x16xf32>
    %24 = vector.shape_cast %23 : vector<1x16x16xf32> to vector<16x16xf32>
    %c0_22 = arith.constant 0 : index
    %c0_23 = arith.constant 0 : index
    %c0_24 = arith.constant 0 : index
    %25 = vector.load %arg6[%c0_22, %c0_23, %c0_24] : memref<2x128x128xf32, #tpu.memory_space<vmem>>, vector<1x128x128xf32>
    %26 = vector.shape_cast %25 : vector<1x128x128xf32> to vector<128x128xf32>
    %cst_25 = arith.constant dense<0.000000e+00> : vector<16x128xf32>
    %27 = tpu.matmul %22, %26, %cst_25 {dimension_numbers = #tpu.dot_dimension_numbers<[1], [0], [0], [1], [0, 0, 1, 1], [], []>} : vector<16x128xf32>, vector<128x128xf32>, vector<16x128xf32> -> vector<16x128xf32>
    %cst_26 = arith.constant dense<0.000000e+00> : vector<16x128xf32>
    %28 = tpu.matmul %24, %27, %cst_26 {dimension_numbers = #tpu.dot_dimension_numbers<[1], [0], [0], [1], [0, 0, 1, 1], [], []>} : vector<16x16xf32>, vector<16x128xf32>, vector<16x128xf32> -> vector<16x128xf32>
    %c1_27 = arith.constant 1 : index
    %c0_28 = arith.constant 0 : index
    %c0_29 = arith.constant 0 : index
    %29 = vector.load %arg5[%c1_27, %c0_28, %c0_29] : memref<2x16x16xf32, #tpu.memory_space<vmem>>, vector<1x16x16xf32>
    %30 = vector.shape_cast %29 : vector<1x16x16xf32> to vector<16x16xf32>
    %c1_30 = arith.constant 1 : index
    %c0_31 = arith.constant 0 : index
    %c0_32 = arith.constant 0 : index
    %31 = vector.load %arg6[%c1_30, %c0_31, %c0_32] : memref<2x128x128xf32, #tpu.memory_space<vmem>>, vector<1x128x128xf32>
    %32 = vector.shape_cast %31 : vector<1x128x128xf32> to vector<128x128xf32>
    %cst_33 = arith.constant dense<0.000000e+00> : vector<16x128xf32>
    %33 = tpu.matmul %22, %32, %cst_33 {dimension_numbers = #tpu.dot_dimension_numbers<[1], [0], [0], [1], [0, 0, 1, 1], [], []>} : vector<16x128xf32>, vector<128x128xf32>, vector<16x128xf32> -> vector<16x128xf32>
    %cst_34 = arith.constant dense<0.000000e+00> : vector<16x128xf32>
    %34 = tpu.matmul %30, %33, %cst_34 {dimension_numbers = #tpu.dot_dimension_numbers<[1], [0], [0], [1], [0, 0, 1, 1], [], []>} : vector<16x16xf32>, vector<16x128xf32>, vector<16x128xf32> -> vector<16x128xf32>
    %35 = arith.addf %28, %34 : vector<16x128xf32>
    %c0_35 = arith.constant 0 : index
    %c0_36 = arith.constant 0 : index
    %36 = vector.load %arg7[%c0_35, %c0_36] : memref<16x128xf32, #tpu.memory_space<vmem>>, vector<16x128xf32>
    %37 = arith.addf %35, %36 : vector<16x128xf32>
    %cst_37 = arith.constant 0.000000e+00 : f32
    %38 = vector.broadcast %cst_37 : f32 to vector<16x128xf32>
    %39 = arith.maximumf %37, %38 : vector<16x128xf32>
    %40 = vector.extract_strided_slice %39 {offsets = [0, 0], sizes = [8, 128], strides = [1, 1]} : vector<16x128xf32> to vector<8x128xf32>
    %cst_38 = arith.constant dense<0xFF800000> : vector<128xf32>
    %41 = vector.multi_reduction <maximumf>, %40, %cst_38 [0] : vector<8x128xf32> to vector<128xf32>
    %42 = vector.shape_cast %41 : vector<128xf32> to vector<1x128xf32>
    %43 = vector.broadcast %42 : vector<1x128xf32> to vector<8x128xf32>
    %44 = arith.subf %40, %43 : vector<8x128xf32>
    %45 = math.exp %44 : vector<8x128xf32>
    %cst_39 = arith.constant dense<0.000000e+00> : vector<128xf32>
    %46 = vector.multi_reduction <add>, %45, %cst_39 [0] : vector<8x128xf32> to vector<128xf32>
    %47 = vector.shape_cast %46 : vector<128xf32> to vector<1x128xf32>
    %48 = math.log %47 : vector<1x128xf32>
    %49 = vector.broadcast %48 : vector<1x128xf32> to vector<8x128xf32>
    %50 = arith.subf %44, %49 : vector<8x128xf32>
    %c0_40 = arith.constant 0 : index
    %c0_41 = arith.constant 0 : index
    %51 = vector.load %arg8[%c0_40, %c0_41] : memref<16x128xf32, #tpu.memory_space<vmem>>, vector<8x128xf32>
    tpu.vector_store %arg8[%c0_40, %c0_41], %50 {strides = array<i32>} : memref<16x128xf32, #tpu.memory_space<vmem>>, vector<8x128xf32>,
    %52 = vector.extract_strided_slice %39 {offsets = [8, 0], sizes = [8, 128], strides = [1, 1]} : vector<16x128xf32> to vector<8x128xf32>
    %cst_42 = arith.constant dense<0xFF800000> : vector<128xf32>
    %53 = vector.multi_reduction <maximumf>, %52, %cst_42 [0] : vector<8x128xf32> to vector<128xf32>
    %54 = vector.shape_cast %53 : vector<128xf32> to vector<1x128xf32>
    %55 = vector.broadcast %54 : vector<1x128xf32> to vector<8x128xf32>
    %56 = arith.subf %52, %55 : vector<8x128xf32>
    %57 = math.exp %56 : vector<8x128xf32>
    %cst_43 = arith.constant dense<0.000000e+00> : vector<128xf32>
    %58 = vector.multi_reduction <add>, %57, %cst_43 [0] : vector<8x128xf32> to vector<128xf32>
    %59 = vector.shape_cast %58 : vector<128xf32> to vector<1x128xf32>
    %60 = math.log %59 : vector<1x128xf32>
    %61 = vector.broadcast %60 : vector<1x128xf32> to vector<8x128xf32>
    %62 = arith.subf %56, %61 : vector<8x128xf32>
    %c8 = arith.constant 8 : index
    %c0_44 = arith.constant 0 : index
    %63 = vector.load %arg8[%c8, %c0_44] : memref<16x128xf32, #tpu.memory_space<vmem>>, vector<8x128xf32>
    tpu.vector_store %arg8[%c8, %c0_44], %62 {strides = array<i32>} : memref<16x128xf32, #tpu.memory_space<vmem>>, vector<8x128xf32>,
    return
  }
  func.func @transform_0(%arg0: i32) -> (i32, i32) {
    %c0_i32 = arith.constant 0 : i32
    %c0_i32_0 = arith.constant 0 : i32
    return %arg0, %c0_i32 : i32, i32
  }
  func.func @transform_1(%arg0: i32) -> (i32, i32) {
    %c0_i32 = arith.constant 0 : i32
    %c0_i32_0 = arith.constant 0 : i32
    %c0_i32_1 = arith.constant 0 : i32
    return %c0_i32, %c0_i32_0 : i32, i32
  }
  func.func @transform_2(%arg0: i32) -> (i32, i32) {
    %c0_i32 = arith.constant 0 : i32
    %c0_i32_0 = arith.constant 0 : i32
    %c0_i32_1 = arith.constant 0 : i32
    return %c0_i32, %c0_i32_0 : i32, i32
  }
  func.func @transform_3(%arg0: i32) -> (i32, i32, i32) {
    %c0_i32 = arith.constant 0 : i32
    %c0_i32_0 = arith.constant 0 : i32
    %c0_i32_1 = arith.constant 0 : i32
    %c0_i32_2 = arith.constant 0 : i32
    return %c0_i32, %c0_i32_0, %c0_i32_1 : i32, i32, i32
  }
  func.func @transform_4(%arg0: i32) -> (i32, i32, i32) {
    %c0_i32 = arith.constant 0 : i32
    %c0_i32_0 = arith.constant 0 : i32
    %c0_i32_1 = arith.constant 0 : i32
    %c0_i32_2 = arith.constant 0 : i32
    return %c0_i32, %c0_i32_0, %c0_i32_1 : i32, i32, i32
  }
  func.func @transform_5(%arg0: i32) -> (i32, i32, i32) {
    %c0_i32 = arith.constant 0 : i32
    %c0_i32_0 = arith.constant 0 : i32
    %c0_i32_1 = arith.constant 0 : i32
    %c0_i32_2 = arith.constant 0 : i32
    return %c0_i32, %c0_i32_0, %c0_i32_1 : i32, i32, i32
  }
  func.func @transform_6(%arg0: i32) -> (i32, i32) {
    %c0_i32 = arith.constant 0 : i32
    %c0_i32_0 = arith.constant 0 : i32
    %c0_i32_1 = arith.constant 0 : i32
    return %c0_i32, %c0_i32_0 : i32, i32
  }
  func.func @transform_7(%arg0: i32) -> (i32, i32) {
    %c0_i32 = arith.constant 0 : i32
    %c0_i32_0 = arith.constant 0 : i32
    return %arg0, %c0_i32 : i32, i32
  }
}

</mosaic_0001>

<bundles_post_ra>
// kernel: mul.4
= control target key start
LH: loop header
LB: loop body
LE: loop exit
PB: predicated region body
PF: predicated region fallthrough
CT: control target
= control target key end

     0   :  { %vm4_vm0 = vcmask 1047556   ;;  %s99_s14 = smov 56   ;;  %s100_s15 = smov 40   ;;  %vm6_vm1 = vcmask 64512   ;;  %vm16_vm2 = vcmask 523712   ;;  %vm26_vm3 = vcmask 458112   ;;  %s196_s0 = inlined_call_operand.vmem [shape: f32[8,8,8], index: 0, kind: input, shape index: {}]   ;;  %s197_s1 = inlined_call_operand.vmem [shape: f32[8,64], index: 1, kind: output, shape index: {}]  }
   0x1   :  { %v78_v0 = vld [vmem:[%s196_s0 + $0x7] ss:$8 sm:$0xf]   ;;  %v82_v3 = vld [vmem:[%s196_s0 + $0x5] ss:$8 sm:$0xf]  }
   0x2   :  { %v79_v1 = vld [vmem:[%s196_s0 + $0x7] ss:$8 sm:$0xf0]   ;;  %v83_v4 = vld [vmem:[%s196_s0 + $0x5] ss:$8 sm:$0xf0]  }
   0x3   :  { %v13_v2 = vsel %vm4_vm0, %v79_v1, %v78_v0  ;;  %v33_v5 = vsel %vm4_vm0, %v83_v4, %v82_v3  ;;  %v80_v6 = vld [vmem:[%s196_s0 + $0x6] ss:$8 sm:$0xf]   ;;  %v84_v8 = vld [vmem:[%s196_s0 + $0x4] ss:$8 sm:$0xf]  }
   0x4   :  { %14 = vrot.lane.b32.xlu0 %v13_v2, %s99_s14  ;;  %34 = vrot.lane.b32.xlu1 %v33_v5, %s100_s15  ;;  %v81_v7 = vld [vmem:[%s196_s0 + $0x6] ss:$8 sm:$0xf0]   ;;  %v85_v9 = vld [vmem:[%s196_s0 + $0x4] ss:$8 sm:$0xf0]  }
   0x5   :  { %v86_v10 = vld [vmem:[%s196_s0 + $0x3] ss:$8 sm:$0xf]   ;;  %v23_v12 = vsel %vm4_vm0, %v81_v7, %v80_v6  ;;  %v43_v14 = vsel %vm4_vm0, %v85_v9, %v84_v8  ;;  %s101_s28 = smov 24   ;;  %s102_s29 = smov 48   ;;  %vm36_vm4 = vcmask 392512  }
   0x6   :  { %v87_v11 = vld [vmem:[%s196_s0 + $0x3] ss:$8 sm:$0xf0]   ;;  %v88_v15 = vld [vmem:[%s196_s0 + $0x2] ss:$8 sm:$0xf]  }
   0x7   :  { %v53_v13 = vsel %vm4_vm0, %v87_v11, %v86_v10  ;;  %v89_v16 = vld [vmem:[%s196_s0 + $0x2] ss:$8 sm:$0xf0]   ;;  %s103_s5 = smov 32   ;;  %s104_s10 = smov 16   ;;  %vm46_vm5 = vcmask 326912  }
   0x8   :  { %54 = vrot.lane.b32.xlu2 %v53_v13, %s101_s28  ;;  %v90_v17 = vld [vmem:[%s196_s0 + $0x1] ss:$8 sm:$0xf]   ;;  %v63_v19 = vsel %vm4_vm0, %v89_v16, %v88_v15  ;;  %s105_s11 = smov 8   ;;  %vm56_vm6 = vcmask 261312   ;;  %vm66_vm7 = vcmask 195712  }
   0x9   :  { %v91_v18 = vld [vmem:[%s196_s0 + $0x1] ss:$8 sm:$0xf0]   ;;  %v2_v21 = vld [vmem:[%s196_s0] ss:$8 sm:$0xf]  }
   0xa   :  { %v73_v20 = vsel %vm4_vm0, %v91_v18, %v90_v17  ;;  %v3_v22 = vld [vmem:[%s196_s0] ss:$8 sm:$0xf0]   ;;  %vm76_vm8 = vcmask 130112  }
   0xb   :  { %v5_v23 = vsel %vm4_vm0, %v3_v22, %v2_v21 }
   0xc   :  { %24 = vrot.lane.b32.xlu0 %v23_v12, %s102_s29  ;;  %44 = vrot.lane.b32.xlu1 %v43_v14, %s103_s5  ;;  %7 = vst.msk [vmem:[%s197_s1] sm:$0xff] %vm6_vm1, %v5_v23  }
  0x10   :  { %64 = vrot.lane.b32.xlu2 %v63_v19, %s104_s10 }
  0x14   :  { %74 = vrot.lane.b32.xlu0 %v73_v20, %s105_s11 }
  0x62   :  { %v55_v24 = vpop.permute.xlu2 %54  }
  0x6a   :  { %v65_v25 = vpop.permute.xlu2 %64  }
  0x76   :  { %v15_v26 = vpop.permute.xlu0 %14   ;;  %v35_v27 = vpop.permute.xlu1 %34  }
  0x77   :  { %17 = vst.msk [vmem:[%s197_s1] sm:$0xff] %vm16_vm2, %v15_v26  }
  0x7e   :  { %v25_v28 = vpop.permute.xlu0 %24   ;;  %v45_v29 = vpop.permute.xlu1 %44  }
  0x7f   :  { %27 = vst.msk [vmem:[%s197_s1] sm:$0xff] %vm26_vm3, %v25_v28  }
  0x80   :  { %37 = vst.msk [vmem:[%s197_s1] sm:$0xff] %vm36_vm4, %v35_v27  }
  0x81   :  { %47 = vst.msk [vmem:[%s197_s1] sm:$0xff] %vm46_vm5, %v45_v29  }
  0x82   :  { %57 = vst.msk [vmem:[%s197_s1] sm:$0xff] %vm56_vm6, %v55_v24  }
  0x83   :  { %67 = vst.msk [vmem:[%s197_s1] sm:$0xff] %vm66_vm7, %v65_v25  }
  0x86   :  { %v75_v30 = vpop.permute.xlu0 %74  }
  0x87   :  { %77 = vst.msk [vmem:[%s197_s1] sm:$0xff] %vm76_vm8, %v75_v30  }

// kernel: tile.13
= control target key start
LH: loop header
LB: loop body
LE: loop exit
PB: predicated region body
PF: predicated region fallthrough
CT: control target
= control target key end

     0   :  { %s22_s0 = inlined_call_operand.vmem [shape: f32[8], index: 0, kind: input, shape index: {}]   ;;  %s23_s1 = inlined_call_operand.vmem [shape: f32[2,8], index: 1, kind: output, shape index: {}]  }
   0x1   :  { %v4_v0 = vld [vmem:[%s22_s0] ss:$0 sm:$0xff] }
   0x2   :  { %5 = vst [vmem:[%s23_s1] sm:$0x3] %v4_v0 }

// kernel: tile.0
= control target key start
LH: loop header
LB: loop body
LE: loop exit
PB: predicated region body
PF: predicated region fallthrough
CT: control target
= control target key end

     0   :  { %s66_s8 = smov 125   ;;  %s67_s9 = smov 123   ;;  %vm7_vm0 = vcmask 7168   ;;  %s117_s0 = inlined_call_operand.vmem [shape: f32[2,8], index: 0, kind: input, shape index: {}]   ;;  %s118_s1 = inlined_call_operand.vmem [shape: f32[16,1], index: 1, kind: output, shape index: {}]  }
   0x1   :  { %v4_v0 = vld [vmem:[%s117_s0] sm:$0x3]  ;;  %s65_s0 = smov 127   ;;  %s68_s10 = smov 126  }
   0x2   :  { %5 = vst [vmem:[#allocation0] sm:$0x3] %v4_v0  ;;  %s69_s11 = smov 124   ;;  %s70_s12 = smov 122  }
   0x3   :  { %s71_s13 = smov 121  }
   0x9   :  { %v9_v1 = vld [vmem:[#allocation0] sm:$0x3]  }
   0xa   :  { %v21_v2 = vld [vmem:[#allocation0] sm:$0x3]   ;;  %10 = vrot.lane.b32.xlu0 %v9_v1, %s65_s0 }
   0xb   :  { %22 = vrot.lane.b32.xlu1 %v21_v2, %s66_s8  ;;  %v33_v3 = vld [vmem:[#allocation0] sm:$0x3]  }
   0xc   :  { %34 = vrot.lane.b32.xlu2 %v33_v3, %s67_s9  ;;  %v15_v4 = vld [vmem:[#allocation0] sm:$0x3]  }
   0xd   :  { %v27_v5 = vld [vmem:[#allocation0] sm:$0x3]  }
   0xe   :  { %v39_v6 = vld [vmem:[#allocation0] sm:$0x3]  }
   0xf   :  { %v45_v7 = vld [vmem:[#allocation0] sm:$0x3]  }
  0x10   :  { %v6_v8 = vld [vmem:[#allocation0] sm:$0x3]  }
  0x11   :  { %8 = vst.msk [vmem:[%s118_s1] ss:$8 sm:$0x3] %vm7_vm0, %v6_v8  }
  0x12   :  { %16 = vrot.lane.b32.xlu0 %v15_v4, %s68_s10 }
  0x13   :  { %28 = vrot.lane.b32.xlu1 %v27_v5, %s69_s11 }
  0x14   :  { %40 = vrot.lane.b32.xlu2 %v39_v6, %s70_s12 }
  0x1a   :  { %46 = vrot.lane.b32.xlu0 %v45_v7, %s71_s13 }
  0x66   :  { %v35_v9 = vpop.permute.xlu2 %34  }
  0x67   :  { %55 = vst.msk [vmem:[%s118_s1 + $0x5] ss:$8 sm:$0x3] %vm7_vm0, %v35_v9  }
  0x6e   :  { %v41_v10 = vpop.permute.xlu2 %40  }
  0x6f   :  { %56 = vst.msk [vmem:[%s118_s1 + $0x6] ss:$8 sm:$0x3] %vm7_vm0, %v41_v10  }
  0x7c   :  { %v11_v11 = vpop.permute.xlu0 %10  }
  0x7d   :  { %v23_v12 = vpop.permute.xlu1 %22   ;;  %51 = vst.msk [vmem:[%s118_s1 + $0x1] ss:$8 sm:$0x3] %vm7_vm0, %v11_v11  }
  0x7e   :  { %53 = vst.msk [vmem:[%s118_s1 + $0x3] ss:$8 sm:$0x3] %vm7_vm0, %v23_v12  }
  0x84   :  { %v17_v13 = vpop.permute.xlu0 %16  }
  0x85   :  { %v29_v14 = vpop.permute.xlu1 %28   ;;  %52 = vst.msk [vmem:[%s118_s1 + $0x2] ss:$8 sm:$0x3] %vm7_vm0, %v17_v13  }
  0x86   :  { %54 = vst.msk [vmem:[%s118_s1 + $0x4] ss:$8 sm:$0x3] %vm7_vm0, %v29_v14  }
  0x8c   :  { %v47_v15 = vpop.permute.xlu0 %46  }
  0x8d   :  { %57 = vst.msk [vmem:[%s118_s1 + $0x7] ss:$8 sm:$0x3] %vm7_vm0, %v47_v15  }

// kernel: mul.36
= control target key start
LH: loop header
LB: loop body
LE: loop exit
PB: predicated region body
PF: predicated region fallthrough
CT: control target
= control target key end

     0   :  { %vm7_vm0 = vcmask 64512   ;;  %vm13_vm1 = vcmask 130112   ;;  %s39_s0 = inlined_call_operand.vmem [shape: f32[2,8], index: 0, kind: input, shape index: {}]   ;;  %s40_s1 = inlined_call_operand.vmem [shape: f32[16], index: 1, kind: output, shape index: {}]  }
   0x1   :  { %v4_v0 = vld [vmem:[%s39_s0] sm:$0x3]  ;;  %s22_s0 = smov 8  }
   0x2   :  { %5 = vst [vmem:[#allocation1] sm:$0x3] %v4_v0 }
   0x9   :  { %v10_v1 = vld [vmem:[#allocation1 + $0x1] sm:$0x1]   ;;  %v6_v2 = vld [vmem:[#allocation1] sm:$0x1]  }
   0xa   :  { %11 = vrot.lane.b32.xlu0 %v10_v1, %s22_s0  ;;  %8 = vst.msk [vmem:[#allocation0] sm:$0x1] %vm7_vm0, %v6_v2  }
  0x7c   :  { %v12_v3 = vpop.permute.xlu0 %11  }
  0x7d   :  { %14 = vst.msk [vmem:[#allocation0] sm:$0x1] %vm13_vm1, %v12_v3  }
  0x84   :  { %v17_v4 = vld [vmem:[#allocation0] sm:$0x1] }
  0x85   :  { %20 = vst [vmem:[%s40_s1] sm:$0x1] %v17_v4 }

// kernel: cnn_second_forward.1
= control target key start
LH: loop header
LB: loop body
LE: loop exit
PB: predicated region body
PF: predicated region fallthrough
CT: control target
= control target key end

     0   :  { %v517_v2 = vmov 0   ;;  %vm330_vm0 = vcmask 130048   ;;  %s930_s0 = inlined_call_operand.vmem [shape: f32[128,128], index: 0, kind: input, shape index: {}]   ;;  %s931_s2 = inlined_call_operand.vmem [shape: f32[16,1], index: 2, kind: input, shape index: {}]   ;;  %s932_s3 = inlined_call_operand.vmem [shape: f32[4,128,128], index: 3, kind: input, shape index: {}]   ;;  %s933_s1 = inlined_call_operand.vmem [shape: f32[16,128], index: 1, kind: input, shape index: {}]   ;;  %s934_s5 = inlined_call_operand.vmem [shape: f32[2,128,128], index: 5, kind: input, shape index: {}]   ;;  %s935_s4 = inlined_call_operand.vmem [shape: f32[2,16,16], index: 4, kind: input, shape index: {}]   ;;  %s936_s6 = inlined_call_operand.vmem [shape: f32[16,128], index: 6, kind: input, shape index: {}]   ;;  %s937_s7 = inlined_call_operand.vmem [shape: f32[16,128], index: 7, kind: output, shape index: {}]  }
   0x1   :  { %v43_v0 = vld [vmem:[%s930_s0 + $0x78] sm:$0xff]  ;;  %v42_v1 = vld [vmem:[%s930_s0 + $0x70] sm:$0xff]  ;;  %508 = vset.pattern.permute.xlu0 %v517_v2  ;;  %v41_v3 = vld [vmem:[%s930_s0 + $0x68] sm:$0xff] }
   0x2   :  { %56 = vmatpush.msra.mxu0 %v43_v0  ;;  %v40_v4 = vld [vmem:[%s930_s0 + $0x60] sm:$0xff]  ;;  %v39_v6 = vld [vmem:[%s930_s0 + $0x58] sm:$0xff]  ;;  %v38_v7 = vld [vmem:[%s930_s0 + $0x50] sm:$0xff] }
   0x3   :  { %v44_v5 = vld [vmem:[%s931_s2] sm:$0xff]  ;;  %v96_v8 = vld [vmem:[%s932_s3 + $0x78] sm:$0xff]  ;;  %v95_v11 = vld [vmem:[%s932_s3 + $0x70] sm:$0xff] }
   0x4   :  { %57 = vmatpush.msra.mxu0 %v42_v1  ;;  %48 = vperm.xlu0 %508, %v44_v5   ;;  %v452_v9 = vld [vmem:[%s932_s3 + $0xf8] sm:$0xff]  ;;  %v37_v12 = vld [vmem:[%s930_s0 + $0x48] sm:$0xff]  ;;  %v451_v13 = vld [vmem:[%s932_s3 + $0xf0] sm:$0xff] }
   0x5   :  { %97 = vmatpush.msra.mxu1 %v96_v8  ;;  %v468_v10 = vld [vmem:[%s932_s3 + $0x178] sm:$0xff]  ;;  %137 = vmatpush.msra.mxu2 %v452_v9  ;;  %v467_v14 = vld [vmem:[%s932_s3 + $0x170] sm:$0xff]  ;;  %v45_v15 = vld [vmem:[%s931_s2 + $0x8] sm:$0xff] }
   0x6   :  { %58 = vmatpush.msra.mxu0 %v41_v3  ;;  %179 = vmatpush.msra.mxu3 %v468_v10  ;;  %v94_v16 = vld [vmem:[%s932_s3 + $0x68] sm:$0xff]  ;;  %v36_v18 = vld [vmem:[%s930_s0 + $0x40] sm:$0xff]  ;;  %v35_v22 = vld [vmem:[%s930_s0 + $0x38] sm:$0xff] }
   0x7   :  { %98 = vmatpush.msra.mxu1 %v95_v11  ;;  %v450_v17 = vld [vmem:[%s932_s3 + $0xe8] sm:$0xff]  ;;  %138 = vmatpush.msra.mxu2 %v451_v13  ;;  %v93_v20 = vld [vmem:[%s932_s3 + $0x60] sm:$0xff]  ;;  %v92_v24 = vld [vmem:[%s932_s3 + $0x58] sm:$0xff] }
   0x8   :  { %59 = vmatpush.msra.mxu0 %v40_v4  ;;  %180 = vmatpush.msra.mxu3 %v467_v14  ;;  %v466_v19 = vld [vmem:[%s932_s3 + $0x168] sm:$0xff]  ;;  %v449_v21 = vld [vmem:[%s932_s3 + $0xe0] sm:$0xff]  ;;  %v448_v25 = vld [vmem:[%s932_s3 + $0xd8] sm:$0xff] }
   0x9   :  { %99 = vmatpush.msra.mxu1 %v94_v16  ;;  %139 = vmatpush.msra.mxu2 %v450_v17  ;;  %v465_v23 = vld [vmem:[%s932_s3 + $0x160] sm:$0xff]  ;;  %v34_v26 = vld [vmem:[%s930_s0 + $0x30] sm:$0xff]  ;;  %v464_v27 = vld [vmem:[%s932_s3 + $0x158] sm:$0xff] }
   0xa   :  { %60 = vmatpush.msra.mxu0 %v39_v6  ;;  %181 = vmatpush.msra.mxu3 %v466_v19  ;;  %v91_v28 = vld [vmem:[%s932_s3 + $0x50] sm:$0xff]  ;;  %v33_v30 = vld [vmem:[%s930_s0 + $0x28] sm:$0xff]  ;;  %v32_v34 = vld [vmem:[%s930_s0 + $0x20] sm:$0xff] }
   0xb   :  { %100 = vmatpush.msra.mxu1 %v93_v20  ;;  %140 = vmatpush.msra.mxu2 %v449_v21  ;;  %v447_v29 = vld [vmem:[%s932_s3 + $0xd0] sm:$0xff]  ;;  %v90_v32 = vld [vmem:[%s932_s3 + $0x48] sm:$0xff]  ;;  %v89_v36 = vld [vmem:[%s932_s3 + $0x40] sm:$0xff] }
   0xc   :  { %61 = vmatpush.msra.mxu0 %v38_v7  ;;  %53 = vperm.xlu0 %508, %v45_v15   ;;  %v463_v31 = vld [vmem:[%s932_s3 + $0x150] sm:$0xff]  ;;  %v446_v33 = vld [vmem:[%s932_s3 + $0xc8] sm:$0xff]  ;;  %v445_v37 = vld [vmem:[%s932_s3 + $0xc0] sm:$0xff] }
   0xd   :  { %182 = vmatpush.msra.mxu3 %v465_v23  ;;  %101 = vmatpush.msra.mxu1 %v92_v24  ;;  %v462_v35 = vld [vmem:[%s932_s3 + $0x148] sm:$0xff]  ;;  %v31_v38 = vld [vmem:[%s930_s0 + $0x18] sm:$0xff]  ;;  %v461_v39 = vld [vmem:[%s932_s3 + $0x140] sm:$0xff] }
   0xe   :  { %62 = vmatpush.msra.mxu0 %v37_v12  ;;  %141 = vmatpush.msra.mxu2 %v448_v25  ;;  %v88_v40 = vld [vmem:[%s932_s3 + $0x38] sm:$0xff]  ;;  %v30_v42 = vld [vmem:[%s930_s0 + $0x10] sm:$0xff]  ;;  %v29_v46 = vld [vmem:[%s930_s0 + $0x8] sm:$0xff] }
   0xf   :  { %183 = vmatpush.msra.mxu3 %v464_v27  ;;  %102 = vmatpush.msra.mxu1 %v91_v28  ;;  %v444_v41 = vld [vmem:[%s932_s3 + $0xb8] sm:$0xff]  ;;  %v87_v44 = vld [vmem:[%s932_s3 + $0x30] sm:$0xff]  ;;  %v28_v48 = vld [vmem:[%s930_s0] sm:$0xff] }
  0x10   :  { %63 = vmatpush.msra.mxu0 %v36_v18  ;;  %142 = vmatpush.msra.mxu2 %v447_v29  ;;  %v460_v43 = vld [vmem:[%s932_s3 + $0x138] sm:$0xff]  ;;  %v443_v45 = vld [vmem:[%s932_s3 + $0xb0] sm:$0xff]  ;;  %v26_v49 = vld [vmem:[%s933_s1] sm:$0xff] }
  0x11   :  { %184 = vmatpush.msra.mxu3 %v463_v31  ;;  %103 = vmatpush.msra.mxu1 %v90_v32  ;;  %v459_v47 = vld [vmem:[%s932_s3 + $0x130] sm:$0xff]  ;;  %v484_v50 = vld [vmem:[%s932_s3 + $0x1f8] sm:$0xff]  ;;  %v482_v52 = vld [vmem:[%s932_s3 + $0x1e8] sm:$0xff] }
  0x12   :  { %64 = vmatpush.msra.mxu0 %v35_v22  ;;  %143 = vmatpush.msra.mxu2 %v446_v33  ;;  %v483_v51 = vld [vmem:[%s932_s3 + $0x1f0] sm:$0xff]  ;;  %v481_v53 = vld [vmem:[%s932_s3 + $0x1e0] sm:$0xff]  ;;  %v27_v54 = vld [vmem:[%s933_s1 + $0x8] sm:$0xff] }
  0x13   :  { %185 = vmatpush.msra.mxu3 %v462_v35  ;;  %104 = vmatpush.msra.mxu1 %v89_v36  ;;  %v480_v55 = vld [vmem:[%s932_s3 + $0x1d8] sm:$0xff]  ;;  %v479_v56 = vld [vmem:[%s932_s3 + $0x1d0] sm:$0xff]  ;;  %v478_v57 = vld [vmem:[%s932_s3 + $0x1c8] sm:$0xff] }
  0x14   :  { %65 = vmatpush.msra.mxu0 %v34_v26  ;;  %144 = vmatpush.msra.mxu2 %v445_v37  ;;  %v477_v58 = vld [vmem:[%s932_s3 + $0x1c0] sm:$0xff]  ;;  %v476_v59 = vld [vmem:[%s932_s3 + $0x1b8] sm:$0xff]  ;;  %v475_v60 = vld [vmem:[%s932_s3 + $0x1b0] sm:$0xff] }
  0x15   :  { %186 = vmatpush.msra.mxu3 %v461_v39  ;;  %105 = vmatpush.msra.mxu1 %v88_v40  ;;  %v86_v61 = vld [vmem:[%s932_s3 + $0x28] sm:$0xff]  ;;  %v85_v1 = vld [vmem:[%s932_s3 + $0x20] sm:$0xff]  ;;  %v84_v5 = vld [vmem:[%s932_s3 + $0x18] sm:$0xff] }
  0x16   :  { %66 = vmatpush.msra.mxu0 %v33_v30  ;;  %145 = vmatpush.msra.mxu2 %v444_v41  ;;  %v442_v62 = vld [vmem:[%s932_s3 + $0xa8] sm:$0xff]  ;;  %v441_v2 = vld [vmem:[%s932_s3 + $0xa0] sm:$0xff]  ;;  %v440_v6 = vld [vmem:[%s932_s3 + $0x98] sm:$0xff] }
  0x17   :  { %187 = vmatpush.msra.mxu3 %v460_v43  ;;  %106 = vmatpush.msra.mxu1 %v87_v44  ;;  %v458_v63 = vld [vmem:[%s932_s3 + $0x128] sm:$0xff]  ;;  %v457_v3 = vld [vmem:[%s932_s3 + $0x120] sm:$0xff]  ;;  %v456_v7 = vld [vmem:[%s932_s3 + $0x118] sm:$0xff] }
  0x18   :  { %67 = vmatpush.msra.mxu0 %v32_v34  ;;  %146 = vmatpush.msra.mxu2 %v443_v45  ;;  %v474_v0 = vld [vmem:[%s932_s3 + $0x1a8] sm:$0xff]  ;;  %v473_v4 = vld [vmem:[%s932_s3 + $0x1a0] sm:$0xff]  ;;  %v472_v8 = vld [vmem:[%s932_s3 + $0x198] sm:$0xff] }
  0x19   :  { %188 = vmatpush.msra.mxu3 %v459_v47  ;;  %107 = vmatpush.msra.mxu1 %v86_v61  ;;  %v83_v9 = vld [vmem:[%s932_s3 + $0x10] sm:$0xff]  ;;  %v82_v13 = vld [vmem:[%s932_s3 + $0x8] sm:$0xff]  ;;  %v81_v17 = vld [vmem:[%s932_s3] sm:$0xff] }
  0x1a   :  { %68 = vmatpush.msra.mxu0 %v31_v38  ;;  %147 = vmatpush.msra.mxu2 %v442_v62  ;;  %v439_v10 = vld [vmem:[%s932_s3 + $0x90] sm:$0xff]  ;;  %v438_v14 = vld [vmem:[%s932_s3 + $0x88] sm:$0xff]  ;;  %v437_v18 = vld [vmem:[%s932_s3 + $0x80] sm:$0xff] }
  0x1b   :  { %189 = vmatpush.msra.mxu3 %v458_v63  ;;  %108 = vmatpush.msra.mxu1 %v85_v1  ;;  %v455_v11 = vld [vmem:[%s932_s3 + $0x110] sm:$0xff]  ;;  %v454_v15 = vld [vmem:[%s932_s3 + $0x108] sm:$0xff]  ;;  %v453_v19 = vld [vmem:[%s932_s3 + $0x100] sm:$0xff] }
  0x1c   :  { %69 = vmatpush.msra.mxu0 %v30_v42  ;;  %148 = vmatpush.msra.mxu2 %v441_v2  ;;  %v471_v12 = vld [vmem:[%s932_s3 + $0x190] sm:$0xff]  ;;  %v470_v16 = vld [vmem:[%s932_s3 + $0x188] sm:$0xff]  ;;  %v469_v20 = vld [vmem:[%s932_s3 + $0x180] sm:$0xff] }
  0x1d   :  { %190 = vmatpush.msra.mxu3 %v457_v3  ;;  %109 = vmatpush.msra.mxu1 %v84_v5  ;;  %v263_v21 = vld [vmem:[%s934_s5 + $0x78] sm:$0xff]  ;;  %v262_v23 = vld [vmem:[%s934_s5 + $0x70] sm:$0xff]  ;;  %v261_v25 = vld [vmem:[%s934_s5 + $0x68] sm:$0xff] }
  0x1e   :  { %70 = vmatpush.msra.mxu0 %v29_v46  ;;  %149 = vmatpush.msra.mxu2 %v440_v6  ;;  %v502_v22 = vld [vmem:[%s934_s5 + $0xf8] sm:$0xff]  ;;  %v501_v24 = vld [vmem:[%s934_s5 + $0xf0] sm:$0xff]  ;;  %v500_v26 = vld [vmem:[%s934_s5 + $0xe8] sm:$0xff] }
  0x1f   :  { %191 = vmatpush.msra.mxu3 %v456_v7  ;;  %110 = vmatpush.msra.mxu1 %v83_v9  ;;  %v260_v27 = vld [vmem:[%s934_s5 + $0x60] sm:$0xff]  ;;  %v259_v29 = vld [vmem:[%s934_s5 + $0x58] sm:$0xff]  ;;  %v258_v31 = vld [vmem:[%s934_s5 + $0x50] sm:$0xff] }
  0x20   :  { %71 = vmatpush.msra.mxu0 %v28_v48  ;;  %150 = vmatpush.msra.mxu2 %v439_v10  ;;  %v499_v28 = vld [vmem:[%s934_s5 + $0xe0] sm:$0xff]  ;;  %v498_v30 = vld [vmem:[%s934_s5 + $0xd8] sm:$0xff]  ;;  %v497_v32 = vld [vmem:[%s934_s5 + $0xd0] sm:$0xff] }
  0x21   :  { %72 = vmatmul.f32.vlgmr.msra.gmra.mxu0 %v26_v49  ;;  %192 = vmatpush.msra.mxu3 %v455_v11  ;;  %v257_v33 = vld [vmem:[%s934_s5 + $0x48] sm:$0xff]  ;;  %v256_v35 = vld [vmem:[%s934_s5 + $0x40] sm:$0xff]  ;;  %v255_v37 = vld [vmem:[%s934_s5 + $0x38] sm:$0xff] }
  0x22   :  { %221 = vmatpush.msrb.mxu0 %v484_v50  ;;  %111 = vmatpush.msra.mxu1 %v82_v13  ;;  %v496_v34 = vld [vmem:[%s934_s5 + $0xc8] sm:$0xff]  ;;  %v495_v36 = vld [vmem:[%s934_s5 + $0xc0] sm:$0xff]  ;;  %v494_v38 = vld [vmem:[%s934_s5 + $0xb8] sm:$0xff] }
  0x23   :  { %151 = vmatpush.msra.mxu2 %v438_v14  ;;  %193 = vmatpush.msra.mxu3 %v454_v15  ;;  %v254_v47 = vld [vmem:[%s934_s5 + $0x30] sm:$0xff]  ;;  %v253_v49 = vld [vmem:[%s934_s5 + $0x28] sm:$0xff] }
  0x24   :  { %222 = vmatpush.msrb.mxu0 %v483_v51  ;;  %112 = vmatpush.msra.mxu1 %v81_v17  ;;  %v493_v48 = vld [vmem:[%s934_s5 + $0xb0] sm:$0xff]  ;;  %v492_v50 = vld [vmem:[%s934_s5 + $0xa8] sm:$0xff]  ;;  %v252_v51 = vld [vmem:[%s934_s5 + $0x20] sm:$0xff] }
  0x25   :  { %152 = vmatpush.msra.mxu2 %v437_v18  ;;  %194 = vmatpush.msra.mxu3 %v453_v19  ;;  %v485_v14 = vld [vmem:[%s935_s4 + $0x10] sm:$0xff]  ;;  %v246_v17 = vld [vmem:[%s935_s4] sm:$0xff]  ;;  %v247_v18 = vld [vmem:[%s935_s4 + $0x8] sm:$0xff] }
  0x26   :  { %223 = vmatpush.msrb.mxu0 %v482_v52  ;;  %264 = vmatpush.msrb.mxu1 %v263_v21  ;;  %v491_v52 = vld [vmem:[%s934_s5 + $0xa0] sm:$0xff] }
  0x27   :  { %307 = vmatpush.msrb.mxu2 %v502_v22  ;;  %v389_v22 = vld [vmem:[%s936_s6] sm:$0xff] }
  0x28   :  { %224 = vmatpush.msrb.mxu0 %v481_v53  ;;  %265 = vmatpush.msrb.mxu1 %v262_v23  ;;  %v251_v53 = vld [vmem:[%s934_s5 + $0x18] sm:$0xff] }
  0x29   :  { %75 = vmatmul.f32.gmra.mxu0 %v27_v54  ;;  %308 = vmatpush.msrb.mxu2 %v501_v24  ;;  %v490_v54 = vld [vmem:[%s934_s5 + $0x98] sm:$0xff] }
  0x2a   :  { %225 = vmatpush.msrb.mxu0 %v480_v55  ;;  %266 = vmatpush.msrb.mxu1 %v261_v25  ;;  %v250_v55 = vld [vmem:[%s934_s5 + $0x10] sm:$0xff] }
  0x2b   :  { %309 = vmatpush.msrb.mxu2 %v500_v26 }
  0x2c   :  { %226 = vmatpush.msrb.mxu0 %v479_v56  ;;  %267 = vmatpush.msrb.mxu1 %v260_v27  ;;  %v489_v56 = vld [vmem:[%s934_s5 + $0x90] sm:$0xff] }
  0x2d   :  { %310 = vmatpush.msrb.mxu2 %v499_v28  ;;  %v390_v28 = vld [vmem:[%s936_s6 + $0x8] sm:$0xff] }
  0x2e   :  { %227 = vmatpush.msrb.mxu0 %v478_v57  ;;  %268 = vmatpush.msrb.mxu1 %v259_v29  ;;  %v249_v57 = vld [vmem:[%s934_s5 + $0x8] sm:$0xff] }
  0x2f   :  { %311 = vmatpush.msrb.mxu2 %v498_v30 }
  0x30   :  { %228 = vmatpush.msrb.mxu0 %v477_v58  ;;  %269 = vmatpush.msrb.mxu1 %v258_v31  ;;  %v488_v58 = vld [vmem:[%s934_s5 + $0x88] sm:$0xff] }
  0x31   :  { %312 = vmatpush.msrb.mxu2 %v497_v32 }
  0x32   :  { %229 = vmatpush.msrb.mxu0 %v476_v59  ;;  %270 = vmatpush.msrb.mxu1 %v257_v33  ;;  %v248_v59 = vld [vmem:[%s934_s5] sm:$0xff] }
  0x33   :  { %313 = vmatpush.msrb.mxu2 %v496_v34 }
  0x34   :  { %230 = vmatpush.msrb.mxu0 %v475_v60  ;;  %271 = vmatpush.msrb.mxu1 %v256_v35  ;;  %v487_v60 = vld [vmem:[%s934_s5 + $0x80] sm:$0xff] }
  0x35   :  { %314 = vmatpush.msrb.mxu2 %v495_v36 }
  0x36   :  { %231 = vmatpush.msrb.mxu0 %v474_v0  ;;  %272 = vmatpush.msrb.mxu1 %v255_v37 }
  0x37   :  { %315 = vmatpush.msrb.mxu2 %v494_v38 }
  0x38   :  { %232 = vmatpush.msrb.mxu0 %v473_v4  ;;  %273 = vmatpush.msrb.mxu1 %v254_v47 }
  0x39   :  { %316 = vmatpush.msrb.mxu2 %v493_v48 }
  0x3a   :  { %233 = vmatpush.msrb.mxu0 %v472_v8  ;;  %274 = vmatpush.msrb.mxu1 %v253_v49 }
  0x3b   :  { %317 = vmatpush.msrb.mxu2 %v492_v50 }
  0x3c   :  { %234 = vmatpush.msrb.mxu0 %v471_v12  ;;  %275 = vmatpush.msrb.mxu1 %v252_v51 }
  0x3d   :  { %318 = vmatpush.msrb.mxu2 %v491_v52 }
  0x3e   :  { %235 = vmatpush.msrb.mxu0 %v470_v16  ;;  %276 = vmatpush.msrb.mxu1 %v251_v53  ;;  %v486_v16 = vld [vmem:[%s935_s4 + $0x18] sm:$0xff] }
  0x3f   :  { %319 = vmatpush.msrb.mxu2 %v490_v54 }
  0x40   :  { %236 = vmatpush.msrb.mxu0 %v469_v20  ;;  %277 = vmatpush.msrb.mxu1 %v250_v55 }
  0x41   :  { %320 = vmatpush.msrb.mxu2 %v489_v56 }
  0x42   :  { %278 = vmatpush.msrb.mxu1 %v249_v57 }
  0x43   :  { %321 = vmatpush.msrb.mxu2 %v488_v58 }
  0x44   :  { %279 = vmatpush.msrb.mxu1 %v248_v59 }
  0x45   :  { %322 = vmatpush.msrb.mxu2 %v487_v60 }
  0x76   :  { %v49_v39 = vpop.permute.xlu0 %48 }
  0x7e   :  { %v54_v43 = vpop.permute.xlu0 %53 }
  0x9e   :  { %v73_v40 = vpop.f32.mrf.mxu0 }
  0x9f   :  { %v74_v41 = vadd.f32 %v73_v40, %v49_v39 }
  0xa1   :  { %v79_v42 = vmax.f32 %v74_v41, 0.0 }
  0xa3   :  { %113 = vmatmul.f32.vlgmr.msra.gmra.mxu1 %v79_v42  ;;  %153 = vmatmul.f32.vlgmr.msra.gmra.mxu2 %v79_v42 }
  0xa4   :  { %195 = vmatmul.f32.vlgmr.msra.gmra.mxu3 %v79_v42  ;;  %237 = vmatmul.f32.vlgmr.msrb.gmra.mxu0 %v79_v42 }
  0xa6   :  { %v76_v44 = vpop.f32.mrf.mxu0 }
  0xa7   :  { %v77_v45 = vadd.f32 %v76_v44, %v54_v43 }
  0xa9   :  { %v80_v46 = vmax.f32 %v77_v45, 0.0 }
  0xab   :  { %116 = vmatmul.f32.gmra.mxu1 %v80_v46  ;;  %156 = vmatmul.f32.gmra.mxu2 %v80_v46 }
  0xac   :  { %198 = vmatmul.f32.gmra.mxu3 %v80_v46  ;;  %240 = vmatmul.f32.gmra.mxu0 %v80_v46 }
 0x120   :  { %v114_v61 = vpop.f32.mrf.mxu1 }
 0x121   :  { %v238_v1 = vpop.f32.mrf.mxu0 }
 0x126   :  { %v154_v62 = vpop.f32.mrf.mxu2 }
 0x127   :  { %v160_v63 = vmax.f32 %v114_v61, %v154_v62  ;;  %v196_v0 = vpop.f32.mrf.mxu3 }
 0x128   :  { %v117_v4 = vpop.f32.mrf.mxu1 }
 0x129   :  { %v202_v2 = vmax.f32 %v160_v63, %v196_v0  ;;  %v241_v9 = vpop.f32.mrf.mxu0 }
 0x12b   :  { %v244_v3 = vmax.f32 %v202_v2, %v238_v1 }
 0x12d   :  { %280 = vmatmul.f32.vlgmr.msrb.gmra.mxu1 %v244_v3  ;;  %323 = vmatmul.f32.vlgmr.msrb.gmra.mxu2 %v244_v3 }
 0x12e   :  { %v157_v5 = vpop.f32.mrf.mxu2 }
 0x12f   :  { %v161_v6 = vmax.f32 %v117_v4, %v157_v5  ;;  %v199_v7 = vpop.f32.mrf.mxu3 }
 0x131   :  { %v203_v8 = vmax.f32 %v161_v6, %v199_v7 }
 0x133   :  { %v245_v10 = vmax.f32 %v203_v8, %v241_v9 }
 0x135   :  { %283 = vmatmul.f32.gmra.mxu1 %v245_v10  ;;  %326 = vmatmul.f32.gmra.mxu2 %v245_v10 }
 0x1aa   :  { %v281_v12 = vpop.f32.mrf.mxu1 }
 0x1b0   :  { %v324_v11 = vpop.f32.mrf.mxu2 }
 0x1b2   :  { %v284_v15 = vpop.f32.mrf.mxu1 }
 0x1b8   :  { %v327_v13 = vpop.f32.mrf.mxu2 }
 0x1b9   :  { %351 = vmatpush.msrb.mxu3 %v327_v13 }
 0x1bb   :  { %352 = vmatpush.msrb.mxu3 %v324_v11 }
 0x1bc   :  { %503 = vmatmul.msk.f32.vlgmr.msrb.gmra.mxu3 %vm330_vm0, %v485_v14 }
 0x1bd   :  { %380 = vmatpush.msra.mxu3 %v284_v15 }
 0x1bf   :  { %381 = vmatpush.msra.mxu3 %v281_v12 }
 0x1c4   :  { %504 = vmatmul.msk.f32.gmra.mxu3 %vm330_vm0, %v486_v16 }
 0x1cc   :  { %505 = vmatmul.msk.f32.vlgmr.msra.gmra.mxu3 %vm330_vm0, %v246_v17 }
 0x1d4   :  { %506 = vmatmul.msk.f32.gmra.mxu3 %vm330_vm0, %v247_v18 }
 0x23f   :  { %v354_v19 = vpop.f32.mrf.mxu3 }
 0x247   :  { %v357_v20 = vpop.f32.mrf.mxu3 }
 0x24f   :  { %v383_v21 = vpop.f32.mrf.mxu3 }
 0x250   :  { %v384_v23 = vadd.f32 %v383_v21, %v354_v19 }
 0x252   :  { %v391_v24 = vadd.f32 %v389_v22, %v384_v23 }
 0x254   :  { %v393_v25 = vmax.f32 %v391_v24, 0.0 }
 0x256   :  { %v395_v26 = vrot.slane %v393_v25, 4 }
 0x257   :  { %v386_v27 = vpop.f32.mrf.mxu3 }
 0x258   :  { %v396_v29 = vmax.f32 %v393_v25, %v395_v26  ;;  %v387_v30 = vadd.f32 %v386_v27, %v357_v20 }
 0x25a   :  { %v397_v31 = vrot.slane %v396_v29, 2  ;;  %v392_v32 = vadd.f32 %v390_v28, %v387_v30 }
 0x25c   :  { %v398_v33 = vmax.f32 %v396_v29, %v397_v31  ;;  %v394_v34 = vmax.f32 %v392_v32, 0.0 }
 0x25e   :  { %v399_v35 = vrot.slane %v398_v33, 1  ;;  %v414_v36 = vrot.slane %v394_v34, 4 }
 0x260   :  { %v400_v37 = vmax.f32 %v398_v33, %v399_v35  ;;  %v415_v38 = vmax.f32 %v394_v34, %v414_v36 }
 0x262   :  { %v401_v39 = vsub.f32 %v393_v25, %v400_v37  ;;  %v416_v40 = vrot.slane %v415_v38, 2 }
 0x264   :  { %v402_v41 = vmul.f32 1.442695, %v401_v39  ;;  %v417_v42 = vmax.f32 %v415_v38, %v416_v40 }
 0x266   :  { %509 = vpow2.f32 %v402_v41  ;;  %v418_v43 = vrot.slane %v417_v42, 1 }
 0x268   :  { %v419_v44 = vmax.f32 %v417_v42, %v418_v43 }
 0x26a   :  { %v420_v45 = vsub.f32 %v394_v34, %v419_v44 }
 0x26c   :  { %v510_v46 = vpop.eup %509  ;;  %v421_v47 = vmul.f32 1.442695, %v420_v45 }
 0x26d   :  { %v404_v48 = vrot.slane %v510_v46, 4 }
 0x26e   :  { %511 = vpow2.f32 %v421_v47 }
 0x26f   :  { %v405_v49 = vadd.f32 %v510_v46, %v404_v48 }
 0x271   :  { %v406_v50 = vrot.slane %v405_v49, 2 }
 0x273   :  { %v407_v51 = vadd.f32 %v406_v50, %v405_v49 }
 0x274   :  { %v512_v52 = vpop.eup %511 }
 0x275   :  { %v408_v53 = vrot.slane %v407_v51, 1  ;;  %v423_v54 = vrot.slane %v512_v52, 4 }
 0x277   :  { %v409_v55 = vadd.f32 %v408_v53, %v407_v51  ;;  %v424_v56 = vadd.f32 %v512_v52, %v423_v54 }
 0x279   :  { %513 = vlog2.f32 %v409_v55  ;;  %v425_v57 = vrot.slane %v424_v56, 2 }
 0x27b   :  { %v426_v58 = vadd.f32 %v425_v57, %v424_v56 }
 0x27d   :  { %v427_v59 = vrot.slane %v426_v58, 1 }
 0x27f   :  { %v514_v60 = vpop.eup %513  ;;  %v428_v61 = vadd.f32 %v427_v59, %v426_v58 }
 0x280   :  { %v411_v62 = vmul.f32 0.6931472, %v514_v60 }
 0x281   :  { %515 = vlog2.f32 %v428_v61 }
 0x282   :  { %v412_v63 = vsub.f32 %v401_v39, %v411_v62 }
 0x284   :  { %413 = vst [vmem:[%s937_s7] sm:$0xff] %v412_v63 }
 0x287   :  { %v516_v0 = vpop.eup %515 }
 0x288   :  { %v430_v1 = vmul.f32 0.6931472, %v516_v0 }
 0x28a   :  { %v431_v2 = vsub.f32 %v420_v45, %v430_v1 }
 0x28c   :  { %432 = vst [vmem:[%s937_s7 + $0x8] sm:$0xff] %v431_v2 }

</bundles_post_ra>
